<compile_context>
chip_gen: v6e
topology: v6e:2x2x1
jax: 0.10.0
libtpu: 0.0.40
codegen_flags: <defaults>
</compile_context>

<pallas_src>
import functools

import jax
import jax.numpy as jnp
from jax.experimental import pallas as pl
from jax.experimental.pallas import tpu as pltpu


_PACKED_ORDER = ("w14", "b14", "w2", "b2", "w5", "b5", "w3r", "w6r", "b36")


def _critic_kernel(
    state_ref, action_ref,
    w14_ref, b14_ref,        # fused layer-1 of both heads: (in_dim, 2*hidden)
    w2_ref, b2_ref,          # Q1 head layer 2
    w5_ref, b5_ref,          # Q2 head layer 2
    w3r_ref, w6r_ref,        # final layers as (1, hidden) f32 rows
    b36_ref,                 # (1, 2) f32 biases [b3, b6]
    q_ref,                   # (tb, 2): column 0 = q1, column 1 = q2
):
    hidden = w2_ref.shape[0]
    wdt = w14_ref.dtype      # weight dtype (f32 or bf16); matmuls accumulate in f32

    # In-kernel concat (XLU shift/select) so layer 1 is ONE K=in_dim MXU pass
    # instead of two padded passes, with no wrapper-side HBM materialization.
    sa = jnp.concatenate([state_ref[...], action_ref[...]], axis=-1).astype(wdt)

    # Fused layer 1 for both heads.
    h14 = jnp.dot(sa, w14_ref[...], preferred_element_type=jnp.float32) + b14_ref[...]
    h14 = jnp.maximum(h14, 0.0)                        # (tb, 2*hidden)

    h = h14[:, :hidden].astype(wdt)                    # Q1 branch (128-aligned slice)
    g = h14[:, hidden:].astype(wdt)                    # Q2 branch

    # Layer 2: two separate (hidden, hidden) dots keeps MXU tile count minimal.
    h2 = jnp.maximum(
        jnp.dot(h, w2_ref[...], preferred_element_type=jnp.float32) + b2_ref[...], 0.0)
    g2 = jnp.maximum(
        jnp.dot(g, w5_ref[...], preferred_element_type=jnp.float32) + b5_ref[...], 0.0)

    # Final (hidden -> 1) layers off the MXU: VPU multiply + lane reduce.
    q1 = jnp.sum(h2 * w3r_ref[...], axis=-1, keepdims=True)      # (tb, 1)
    q2 = jnp.sum(g2 * w6r_ref[...], axis=-1, keepdims=True)      # (tb, 1)
    q = jnp.concatenate([q1, q2], axis=-1) + b36_ref[...]        # (tb, 2), one store
    q_ref[...] = q.astype(q_ref.dtype)


def pack_critic_params(params, dtype=jnp.bfloat16):
    """Repack per-layer params into the fused kernel layout.

    Call once per optimizer update (outside the step loop).  Matmul weights are
    cast to `dtype`; bfloat16 is recommended on every TPU generation (v5e, v6e,
    v7x) -- it halves the dominant per-call weight DMA and the MXU is
    bf16-native.  In the bf16 path the layer *inputs* are also cast to bf16
    inside the kernel; accumulation stays float32 via preferred_element_type.
    Biases and the tiny final-layer rows always stay float32.
    """
    w14 = jnp.concatenate([params["w1"], params["w4"]], axis=1)        # (in_dim, 2h)
    b14 = jnp.concatenate([params["b1"], params["b4"]], axis=1)        # (1, 2h)
    return {
        "w14": w14.astype(dtype), "b14": b14.astype(jnp.float32),
        "w2": params["w2"].astype(dtype), "b2": params["b2"].astype(jnp.float32),
        "w5": params["w5"].astype(dtype), "b5": params["b5"].astype(jnp.float32),
        "w3r": params["w3"].T.astype(jnp.float32),                     # (1, h)
        "w6r": params["w6"].T.astype(jnp.float32),                     # (1, h)
        "b36": jnp.concatenate([params["b3"], params["b6"]], axis=1).astype(jnp.float32),
    }


def _round_up(x, m):
    return ((x + m - 1) // m) * m


def _pick_batch_tile(batch, tile_b, min_grid_steps):
    """Largest batch tile <= tile_b yielding >= min_grid_steps grid steps
    (so both v7x TensorCores get work at large batch), sublane-aligned to 8."""
    if batch <= 8:
        return batch                                   # single block == full dim
    tb = _round_up(pl.cdiv(batch, max(min_grid_steps, 1)), 8)
    return max(8, min(tb, tile_b))


def _batch_map(i):
    return (i, 0)


def _const_map(i):
    return (0, 0)


@functools.partial(jax.jit, static_argnames=("tile_b", "min_grid_steps", "return_packed"))
def critic_forward(state, action, packed, *, tile_b=1024, min_grid_steps=2,
                   return_packed=False):
    """state: (B, state_dim), action: (B, action_dim).

    Returns (q1, q2), each (B, 1) -- or the lane-packed (B, 2) array when
    return_packed=True (preferred for TD3 targets: jnp.min(q, axis=-1)).
    """
    B, state_dim = state.shape
    action_dim = action.shape[1]
    hidden = packed["w2"].shape[0]

    tb = _pick_batch_tile(B, tile_b, min_grid_steps)
    grid = (pl.cdiv(B, tb),)

    in_specs = [
        pl.BlockSpec((tb, state_dim), _batch_map),
        pl.BlockSpec((tb, action_dim), _batch_map),
    ] + [pl.BlockSpec(packed[name].shape, _const_map) for name in _PACKED_ORDER]
    out_specs = pl.BlockSpec((tb, 2), _batch_map)

    # Advisory cost hint so XLA schedules this small kernel sensibly.
    flops = 2 * B * ((state_dim + action_dim) * 2 * hidden
                     + 2 * hidden * hidden
                     + 2 * hidden)
    bytes_accessed = int(
        sum(packed[n].size * packed[n].dtype.itemsize for n in _PACKED_ORDER)
        + (state.size + action.size) * state.dtype.itemsize
        + B * 2 * 4)

    q = pl.pallas_call(
        _critic_kernel,
        out_shape=jax.ShapeDtypeStruct((B, 2), jnp.float32),
        grid=grid,
        in_specs=in_specs,
        out_specs=out_specs,
        compiler_params=pltpu.CompilerParams(
            dimension_semantics=("parallel",),
            vmem_limit_bytes=48 * 1024 * 1024,   # headroom for larger tile_b sweeps
        ),
        cost_estimate=pl.CostEstimate(
            flops=flops, transcendentals=0, bytes_accessed=bytes_accessed),
    )(state, action, *(packed[name] for name in _PACKED_ORDER))

    if return_packed:
        return q
    return q[:, 0:1], q[:, 1:2]


def init_critic_params(key, state_dim, action_dim, hidden=256):
    """PyTorch-Linear-style init (uniform +/- 1/sqrt(fan_in)).

    Weights stored as (in_features, out_features) -- already transposed relative
    to nn.Linear -- biases as (1, out_features).
    """
    in_dim = state_dim + action_dim
    dims = [
        ("w1", "b1", in_dim, hidden),
        ("w2", "b2", hidden, hidden),
        ("w3", "b3", hidden, 1),
        ("w4", "b4", in_dim, hidden),
        ("w5", "b5", hidden, hidden),
        ("w6", "b6", hidden, 1),
    ]
    params = {}
    keys = jax.random.split(key, 2 * len(dims))
    for i, (wn, bn, fan_in, fan_out) in enumerate(dims):
        bound = 1.0 / jnp.sqrt(jnp.float32(fan_in))
        params[wn] = jax.random.uniform(
            keys[2 * i], (fan_in, fan_out), jnp.float32, -bound, bound)
        params[bn] = jax.random.uniform(
            keys[2 * i + 1], (1, fan_out), jnp.float32, -bound, bound)
    return params


def critic_forward_ref(state, action, params):
    """Pure-JAX reference (mirrors the PyTorch module exactly)."""
    sa = jnp.concatenate([state, action], axis=1)
    h = jax.nn.relu(sa @ params["w1"] + params["b1"])
    h = jax.nn.relu(h @ params["w2"] + params["b2"])
    q1 = h @ params["w3"] + params["b3"]
    g = jax.nn.relu(sa @ params["w4"] + params["b4"])
    g = jax.nn.relu(g @ params["w5"] + params["b5"])
    q2 = g @ params["w6"] + params["b6"]
    return q1, q2


if __name__ == "__main__":
    key = jax.random.PRNGKey(0)
    k_state, k_action, k_params = jax.random.split(key, 3)

    batch = 8
    state_dim = 12
    action_dim = 4

    state = jax.random.normal(k_state, (batch, state_dim), jnp.float32)
    action = jax.random.normal(k_action, (batch, action_dim), jnp.float32)
    params = init_critic_params(k_params, state_dim, action_dim)
    q1_ref, q2_ref = critic_forward_ref(state, action, params)

    # float32 weights: tight parity with the reference (both use the TPU's
    # default matmul precision, so allow a small tolerance for pass ordering).
    packed_f32 = pack_critic_params(params, dtype=jnp.float32)
    q1, q2 = critic_forward(state, action, packed_f32)
    jax.block_until_ready((q1, q2))
    assert q1.shape == (batch, 1) and q2.shape == (batch, 1)
    assert jnp.allclose(q1, q1_ref, atol=2e-2, rtol=2e-2)
    assert jnp.allclose(q2, q2_ref, atol=2e-2, rtol=2e-2)

    # bfloat16 weights (recommended default on v5e/v6e/v7x): halves weight DMA,
    # f32 accumulation via preferred_element_type.
    packed_bf16 = pack_critic_params(params)   # dtype=jnp.bfloat16 by default
    q1b, q2b = critic_forward(state, action, packed_bf16)
    jax.block_until_ready((q1b, q2b))
    assert q1b.shape == (batch, 1) and q2b.shape == (batch, 1)
    assert float(jnp.max(jnp.abs(q1b - q1_ref))) < 1.5e-1
    assert float(jnp.max(jnp.abs(q2b - q2_ref))) < 1.5e-1

    # Multi-step "parallel" grid path (>=2 steps, ragged last batch block) with
    # the packed (B, 2) return used by TD3-style consumers.
    batch2 = 37
    k_s2, k_a2 = jax.random.split(jax.random.PRNGKey(1))
    state2 = jax.random.normal(k_s2, (batch2, state_dim), jnp.float32)
    action2 = jax.random.normal(k_a2, (batch2, action_dim), jnp.float32)
    q_packed = critic_forward(state2, action2, packed_f32, return_packed=True)
    jax.block_until_ready(q_packed)
    q1_ref2, q2_ref2 = critic_forward_ref(state2, action2, params)
    assert q_packed.shape == (batch2, 2)
    assert jnp.allclose(q_packed[:, 0:1], q1_ref2, atol=2e-2, rtol=2e-2)
    assert jnp.allclose(q_packed[:, 1:2], q2_ref2, atol=2e-2, rtol=2e-2)

    print("KERNEL_OK")
</pallas_src>

<mosaic_0001>
module attributes {stable_mosaic.version = 11 : i64} {
  func.func @_critic_kernel(%arg0: i32, %arg1: memref<8x12xf32, #tpu.memory_space<vmem>>, %arg2: memref<8x4xf32, #tpu.memory_space<vmem>>, %arg3: memref<16x512xf32, #tpu.memory_space<vmem>>, %arg4: memref<1x512xf32, #tpu.memory_space<vmem>>, %arg5: memref<256x256xf32, #tpu.memory_space<vmem>>, %arg6: memref<1x256xf32, #tpu.memory_space<vmem>>, %arg7: memref<256x256xf32, #tpu.memory_space<vmem>>, %arg8: memref<1x256xf32, #tpu.memory_space<vmem>>, %arg9: memref<1x256xf32, #tpu.memory_space<vmem>>, %arg10: memref<1x256xf32, #tpu.memory_space<vmem>>, %arg11: memref<1x2xf32, #tpu.memory_space<vmem>>, %arg12: memref<8x2xf32, #tpu.memory_space<vmem>>) attributes {dimension_semantics = [#tpu.dimension_semantics<parallel>], iteration_bounds = array<i64: 1>, scalar_prefetch = 0 : i64, scratch_operands = 0 : i64, tpu.core_type = #tpu.core_type<tc>, window_params = [{transform_indices = @transform_0, window_bounds = array<i64: 8, 12>}, {transform_indices = @transform_1, window_bounds = array<i64: 8, 4>}, {pipeline_mode = #tpu.pipeline_mode<synchronous>, transform_indices = @transform_2, window_bounds = array<i64: 16, 512>}, {pipeline_mode = #tpu.pipeline_mode<synchronous>, transform_indices = @transform_3, window_bounds = array<i64: 1, 512>}, {pipeline_mode = #tpu.pipeline_mode<synchronous>, transform_indices = @transform_4, window_bounds = array<i64: 256, 256>}, {pipeline_mode = #tpu.pipeline_mode<synchronous>, transform_indices = @transform_5, window_bounds = array<i64: 1, 256>}, {pipeline_mode = #tpu.pipeline_mode<synchronous>, transform_indices = @transform_6, window_bounds = array<i64: 256, 256>}, {pipeline_mode = #tpu.pipeline_mode<synchronous>, transform_indices = @transform_7, window_bounds = array<i64: 1, 256>}, {pipeline_mode = #tpu.pipeline_mode<synchronous>, transform_indices = @transform_8, window_bounds = array<i64: 1, 256>}, {pipeline_mode = #tpu.pipeline_mode<synchronous>, transform_indices = @transform_9, window_bounds = array<i64: 1, 256>}, {pipeline_mode = #tpu.pipeline_mode<synchronous>, transform_indices = @transform_10, window_bounds = array<i64: 1, 2>}, {transform_indices = @transform_11, window_bounds = array<i64: 8, 2>}]} {
    %c0 = arith.constant 0 : index
    %c0_0 = arith.constant 0 : index
    %0 = vector.load %arg1[%c0, %c0_0] : memref<8x12xf32, #tpu.memory_space<vmem>>, vector<8x12xf32>
    %c0_1 = arith.constant 0 : index
    %c0_2 = arith.constant 0 : index
    %1 = vector.load %arg2[%c0_1, %c0_2] : memref<8x4xf32, #tpu.memory_space<vmem>>, vector<8x4xf32>
    %2 = tpu.concatenate %0, %1 in 1 : vector<8x12xf32>, vector<8x4xf32> -> vector<8x16xf32>
    %c0_3 = arith.constant 0 : index
    %c0_4 = arith.constant 0 : index
    %3 = vector.load %arg3[%c0_3, %c0_4] : memref<16x512xf32, #tpu.memory_space<vmem>>, vector<16x512xf32>
    %cst = arith.constant dense<0.000000e+00> : vector<8x512xf32>
    %4 = tpu.matmul %2, %3, %cst {dimension_numbers = #tpu.dot_dimension_numbers<[1], [0], [0], [1], [0, 0, 1, 1], [], []>} : vector<8x16xf32>, vector<16x512xf32>, vector<8x512xf32> -> vector<8x512xf32>
    %c0_5 = arith.constant 0 : index
    %c0_6 = arith.constant 0 : index
    %5 = vector.load %arg4[%c0_5, %c0_6] : memref<1x512xf32, #tpu.memory_space<vmem>>, vector<1x512xf32>
    %6 = vector.broadcast %5 : vector<1x512xf32> to vector<8x512xf32>
    %7 = arith.addf %4, %6 : vector<8x512xf32>
    %cst_7 = arith.constant 0.000000e+00 : f32
    %8 = vector.broadcast %cst_7 : f32 to vector<8x512xf32>
    %9 = arith.maximumf %7, %8 : vector<8x512xf32>
    %10 = vector.extract_strided_slice %9 {offsets = [0, 0], sizes = [8, 256], strides = [1, 1]} : vector<8x512xf32> to vector<8x256xf32>
    %11 = vector.extract_strided_slice %9 {offsets = [0, 256], sizes = [8, 256], strides = [1, 1]} : vector<8x512xf32> to vector<8x256xf32>
    %c0_8 = arith.constant 0 : index
    %c0_9 = arith.constant 0 : index
    %12 = vector.load %arg5[%c0_8, %c0_9] : memref<256x256xf32, #tpu.memory_space<vmem>>, vector<256x256xf32>
    %cst_10 = arith.constant dense<0.000000e+00> : vector<8x256xf32>
    %13 = tpu.matmul %10, %12, %cst_10 {dimension_numbers = #tpu.dot_dimension_numbers<[1], [0], [0], [1], [0, 0, 1, 1], [], []>} : vector<8x256xf32>, vector<256x256xf32>, vector<8x256xf32> -> vector<8x256xf32>
    %c0_11 = arith.constant 0 : index
    %c0_12 = arith.constant 0 : index
    %14 = vector.load %arg6[%c0_11, %c0_12] : memref<1x256xf32, #tpu.memory_space<vmem>>, vector<1x256xf32>
    %15 = vector.broadcast %14 : vector<1x256xf32> to vector<8x256xf32>
    %16 = arith.addf %13, %15 : vector<8x256xf32>
    %cst_13 = arith.constant 0.000000e+00 : f32
    %17 = vector.broadcast %cst_13 : f32 to vector<8x256xf32>
    %18 = arith.maximumf %16, %17 : vector<8x256xf32>
    %c0_14 = arith.constant 0 : index
    %c0_15 = arith.constant 0 : index
    %19 = vector.load %arg7[%c0_14, %c0_15] : memref<256x256xf32, #tpu.memory_space<vmem>>, vector<256x256xf32>
    %cst_16 = arith.constant dense<0.000000e+00> : vector<8x256xf32>
    %20 = tpu.matmul %11, %19, %cst_16 {dimension_numbers = #tpu.dot_dimension_numbers<[1], [0], [0], [1], [0, 0, 1, 1], [], []>} : vector<8x256xf32>, vector<256x256xf32>, vector<8x256xf32> -> vector<8x256xf32>
    %c0_17 = arith.constant 0 : index
    %c0_18 = arith.constant 0 : index
    %21 = vector.load %arg8[%c0_17, %c0_18] : memref<1x256xf32, #tpu.memory_space<vmem>>, vector<1x256xf32>
    %22 = vector.broadcast %21 : vector<1x256xf32> to vector<8x256xf32>
    %23 = arith.addf %20, %22 : vector<8x256xf32>
    %cst_19 = arith.constant 0.000000e+00 : f32
    %24 = vector.broadcast %cst_19 : f32 to vector<8x256xf32>
    %25 = arith.maximumf %23, %24 : vector<8x256xf32>
    %c0_20 = arith.constant 0 : index
    %c0_21 = arith.constant 0 : index
    %26 = vector.load %arg9[%c0_20, %c0_21] : memref<1x256xf32, #tpu.memory_space<vmem>>, vector<1x256xf32>
    %27 = vector.broadcast %26 : vector<1x256xf32> to vector<8x256xf32>
    %28 = arith.mulf %18, %27 : vector<8x256xf32>
    %cst_22 = arith.constant dense<0.000000e+00> : vector<8xf32>
    %29 = vector.multi_reduction <add>, %28, %cst_22 [1] : vector<8x256xf32> to vector<8xf32>
    %30 = vector.shape_cast %29 : vector<8xf32> to vector<8x1xf32>
    %c0_23 = arith.constant 0 : index
    %c0_24 = arith.constant 0 : index
    %31 = vector.load %arg10[%c0_23, %c0_24] : memref<1x256xf32, #tpu.memory_space<vmem>>, vector<1x256xf32>
    %32 = vector.broadcast %31 : vector<1x256xf32> to vector<8x256xf32>
    %33 = arith.mulf %25, %32 : vector<8x256xf32>
    %cst_25 = arith.constant dense<0.000000e+00> : vector<8xf32>
    %34 = vector.multi_reduction <add>, %33, %cst_25 [1] : vector<8x256xf32> to vector<8xf32>
    %35 = vector.shape_cast %34 : vector<8xf32> to vector<8x1xf32>
    %36 = tpu.concatenate %30, %35 in 1 : vector<8x1xf32>, vector<8x1xf32> -> vector<8x2xf32>
    %c0_26 = arith.constant 0 : index
    %c0_27 = arith.constant 0 : index
    %37 = vector.load %arg11[%c0_26, %c0_27] : memref<1x2xf32, #tpu.memory_space<vmem>>, vector<1x2xf32>
    %38 = vector.broadcast %37 : vector<1x2xf32> to vector<8x2xf32>
    %39 = arith.addf %36, %38 : vector<8x2xf32>
    %c0_28 = arith.constant 0 : index
    %c0_29 = arith.constant 0 : index
    %40 = vector.load %arg12[%c0_28, %c0_29] : memref<8x2xf32, #tpu.memory_space<vmem>>, vector<8x2xf32>
    tpu.vector_store %arg12[%c0_28, %c0_29], %39 {strides = array<i32>} : memref<8x2xf32, #tpu.memory_space<vmem>>, vector<8x2xf32>,
    return
  }
  func.func @transform_0(%arg0: i32) -> (i32, i32) {
    %c0_i32 = arith.constant 0 : i32
    %c0_i32_0 = arith.constant 0 : i32
    return %arg0, %c0_i32 : i32, i32
  }
  func.func @transform_1(%arg0: i32) -> (i32, i32) {
    %c0_i32 = arith.constant 0 : i32
    %c0_i32_0 = arith.constant 0 : i32
    return %arg0, %c0_i32 : i32, i32
  }
  func.func @transform_2(%arg0: i32) -> (i32, i32) {
    %c0_i32 = arith.constant 0 : i32
    %c0_i32_0 = arith.constant 0 : i32
    %c0_i32_1 = arith.constant 0 : i32
    return %c0_i32, %c0_i32_0 : i32, i32
  }
  func.func @transform_3(%arg0: i32) -> (i32, i32) {
    %c0_i32 = arith.constant 0 : i32
    %c0_i32_0 = arith.constant 0 : i32
    %c0_i32_1 = arith.constant 0 : i32
    return %c0_i32, %c0_i32_0 : i32, i32
  }
  func.func @transform_4(%arg0: i32) -> (i32, i32) {
    %c0_i32 = arith.constant 0 : i32
    %c0_i32_0 = arith.constant 0 : i32
    %c0_i32_1 = arith.constant 0 : i32
    return %c0_i32, %c0_i32_0 : i32, i32
  }
  func.func @transform_5(%arg0: i32) -> (i32, i32) {
    %c0_i32 = arith.constant 0 : i32
    %c0_i32_0 = arith.constant 0 : i32
    %c0_i32_1 = arith.constant 0 : i32
    return %c0_i32, %c0_i32_0 : i32, i32
  }
  func.func @transform_6(%arg0: i32) -> (i32, i32) {
    %c0_i32 = arith.constant 0 : i32
    %c0_i32_0 = arith.constant 0 : i32
    %c0_i32_1 = arith.constant 0 : i32
    return %c0_i32, %c0_i32_0 : i32, i32
  }
  func.func @transform_7(%arg0: i32) -> (i32, i32) {
    %c0_i32 = arith.constant 0 : i32
    %c0_i32_0 = arith.constant 0 : i32
    %c0_i32_1 = arith.constant 0 : i32
    return %c0_i32, %c0_i32_0 : i32, i32
  }
  func.func @transform_8(%arg0: i32) -> (i32, i32) {
    %c0_i32 = arith.constant 0 : i32
    %c0_i32_0 = arith.constant 0 : i32
    %c0_i32_1 = arith.constant 0 : i32
    return %c0_i32, %c0_i32_0 : i32, i32
  }
  func.func @transform_9(%arg0: i32) -> (i32, i32) {
    %c0_i32 = arith.constant 0 : i32
    %c0_i32_0 = arith.constant 0 : i32
    %c0_i32_1 = arith.constant 0 : i32
    return %c0_i32, %c0_i32_0 : i32, i32
  }
  func.func @transform_10(%arg0: i32) -> (i32, i32) {
    %c0_i32 = arith.constant 0 : i32
    %c0_i32_0 = arith.constant 0 : i32
    %c0_i32_1 = arith.constant 0 : i32
    return %c0_i32, %c0_i32_0 : i32, i32
  }
  func.func @transform_11(%arg0: i32) -> (i32, i32) {
    %c0_i32 = arith.constant 0 : i32
    %c0_i32_0 = arith.constant 0 : i32
    return %arg0, %c0_i32 : i32, i32
  }
}

</mosaic_0001>

<bundles_post_ra>
// kernel: critic_forward.1
= control target key start
LH: loop header
LB: loop body
LE: loop exit
PB: predicated region body
PF: predicated region fallthrough
CT: control target
= control target key end

     0   :  { %16 = vsyncpa [#allocation3], 0  ;;  %s798_s0 = inlined_call_operand.vmem [shape: f32[8,12], index: 0, kind: input, shape index: {}]   ;;  %s799_s1 = inlined_call_operand.vmem [shape: f32[8,4], index: 1, kind: input, shape index: {}]   ;;  %s800_s2 = inlined_call_operand.hbm [shape: f32[16,512], index: 2, kind: input, shape index: {}]   ;;  %s801_s3 = inlined_call_operand.vmem [shape: f32[1,512], index: 3, kind: input, shape index: {}]   ;;  %s802_s4 = inlined_call_operand.hbm [shape: f32[256,256], index: 4, kind: input, shape index: {}]   ;;  %s803_s5 = inlined_call_operand.vmem [shape: f32[1,256], index: 5, kind: input, shape index: {}]   ;;  %s804_s6 = inlined_call_operand.hbm [shape: f32[256,256], index: 6, kind: input, shape index: {}]   ;;  %s805_s7 = inlined_call_operand.vmem [shape: f32[1,256], index: 7, kind: input, shape index: {}]   ;;  %s806_s8 = inlined_call_operand.vmem [shape: f32[1,256], index: 8, kind: input, shape index: {}]   ;;  %s807_s9 = inlined_call_operand.vmem [shape: f32[1,256], index: 9, kind: input, shape index: {}]   ;;  %s808_s10 = inlined_call_operand.vmem [shape: f32[1,2], index: 10, kind: input, shape index: {}]   ;;  %s809_s11 = inlined_call_operand.vmem [shape: f32[8,2], index: 11, kind: output, shape index: {}]  }
   0x1   :  { %17 = vsyncpa [#allocation5], 0  ;;  %s693_s17 = smov [#allocation4]  }
   0x2   :  { %s41_s18 = sshll.u32 %s693_s17, 4  ;;  %s42_s18 = int_to_ptr.vmem [resolvable:$true] %s41_s18 }
   0x3   :  { %s637_s19 = scalar_lea.vmem %s42_s18, 8192  ;;  %p642_p1 = scmp.lt.s32.totalorder %s42_s18, %s42_s18 }
   0x4   :  { %p638_p0 = scmp.ne.s32.totalorder %s42_s18, %s637_s19  ;;  %p643_p2 = scmp.lt.s32.totalorder %s637_s19, %s637_s19 }
   0x6   :  { %p644_p3 = por %p643_p2, %p642_p1 }
   0x8   :  { %p645_p4 = pnand %p644_p3, %p638_p0 }
   0xa   :  { %648 = shalt.err (!%p645_p4)
}
   0xb   :  { %s694_s20 = smov 256   ;;  %s695_s21 = smov 16  }
   0xc   :  { %47 = dma.hbm_to_vmem [thread:$0]  %s802_s4, 8192, %s42_s18, [#allocation5], %s694_s20, %s694_s20, %s695_s21  }
   0xd   :  { %s696_s24 = smov [#allocation2]  }
   0xe   :  { %s27_s25 = sshll.u32 %s696_s24, 4  ;;  %s28_s25 = int_to_ptr.vmem [resolvable:$true] %s27_s25 }
   0xf   :  { %s657_s26 = scalar_lea.vmem %s28_s25, 1024  ;;  %p662_p6 = scmp.lt.s32.totalorder %s28_s25, %s28_s25 }
  0x10   :  { %p658_p5 = scmp.ne.s32.totalorder %s28_s25, %s657_s26  ;;  %p663_p7 = scmp.lt.s32.totalorder %s657_s26, %s657_s26 }
  0x12   :  { %p664_p8 = por %p663_p7, %p662_p6 }
  0x14   :  { %p665_p9 = pnand %p664_p8, %p658_p5 }
  0x16   :  { %668 = shalt.err (!%p665_p9)
}
  0x17   :  { %s697_s27 = smov 512   ;;  %s698_s28 = smov 32  }
  0x18   :  { %33 = dma.hbm_to_vmem [thread:$0]  %s800_s2, 1024, %s28_s25, [#allocation3], %s697_s27, %s697_s27, %s698_s28  }
  0x19   :  { %s699_s12 = smov [#allocation6]  }
  0x1a   :  { %s55_s13 = sshll.u32 %s699_s12, 4  ;;  %s56_s13 = int_to_ptr.vmem [resolvable:$true] %s55_s13 }
  0x1b   :  { %s677_s4 = scalar_lea.vmem %s56_s13, 8192  ;;  %p682_p11 = scmp.lt.s32.totalorder %s56_s13, %s56_s13 }
  0x1c   :  { %p678_p10 = scmp.ne.s32.totalorder %s56_s13, %s677_s4  ;;  %p683_p12 = scmp.lt.s32.totalorder %s677_s4, %s677_s4 }
  0x1e   :  { %p684_p13 = por %p683_p12, %p682_p11 }
  0x20   :  { %p685_p0 = pnand %p684_p13, %p678_p10 }
  0x22   :  { %688 = shalt.err (!%p685_p0)
}
  0x23   :  { %61 = dma.hbm_to_vmem [thread:$0]  %s804_s6, 8192, %s56_s13, [#allocation5], %s694_s20, %s694_s20, %s695_s21  }
  0x24   :  { %689 = dma.done.wait [#allocation3], 1024  }
  0x25   :  { %690 = vsyncadd [#allocation3], 4294966272 }
  0x26   :  { %691 = dma.done.wait [#allocation5], 16384  }
  0x27   :  { %692 = vsyncadd [#allocation5], 4294950912  ;;  %v700_v0 = vmov 0.0   ;;  %v80_v1 = vld [vmem:[%s799_s1] sm:$0xff]  ;;  %v92_v2 = vld [vmem:[#allocation2 + $0x28] sm:$0xff]  ;;  %s701_s17 = smov 12  }
  0x28   :  { %185 = vmatprep.mubr.f32.mxu0 %v700_v0  ;;  %256 = vmatprep.mubr.f32.mxu1 %v700_v0  ;;  %v94_v3 = vld [vmem:[#allocation2 + $0x38] sm:$0xff]  ;;  %v91_v4 = vld [vmem:[#allocation2 + $0x20] sm:$0xff]  ;;  %v93_v5 = vld [vmem:[#allocation2 + $0x30] sm:$0xff]  ;;  %vm85_vm0 = vcmask 97280   ;;  %vm117_vm1 = vcmask 130048   ;;  %vm599_vm2 = vcmask 7168  }
  0x29   :  { %82 = vrot.lane.b32.xlu0 %v80_v1, %s701_s17  ;;  %149 = vmatprep.subr.mxu0 %v92_v2  ;;  %v88_v6 = vld [vmem:[#allocation2 + $0x8] sm:$0xff]  ;;  %v90_v7 = vld [vmem:[#allocation2 + $0x18] sm:$0xff]  ;;  %v87_v8 = vld [vmem:[#allocation2] sm:$0xff]  ;;  %vm609_vm3 = vcmask 15360  }
  0x2a   :  { %220 = vmatprep.subr.mxu1 %v94_v3  ;;  %150 = vmatpush1.msra.mxu0 %v91_v4  ;;  %v89_v9 = vld [vmem:[#allocation2 + $0x10] sm:$0xff]  ;;  %v298_v10 = vld [vmem:[#allocation4 + $0xf8] sm:$0xff]  ;;  %v79_v12 = vld [vmem:[%s798_s0] sm:$0xff] }
  0x2b   :  { %221 = vmatpush1.msra.mxu1 %v93_v5  ;;  %151 = vmatprep.subr.mxu0 %v88_v6  ;;  %v447_v11 = vld [vmem:[#allocation6 + $0xf8] sm:$0xff]  ;;  %v297_v14 = vld [vmem:[#allocation4 + $0xf0] sm:$0xff]  ;;  %v296_v17 = vld [vmem:[#allocation4 + $0xe8] sm:$0xff] }
  0x2c   :  { %222 = vmatprep.subr.mxu1 %v90_v7  ;;  %152 = vmatpush1.msra.mxu0 %v87_v8  ;;  %v446_v15 = vld [vmem:[#allocation6 + $0xf0] sm:$0xff]  ;;  %v445_v18 = vld [vmem:[#allocation6 + $0xe8] sm:$0xff]  ;;  %v295_v19 = vld [vmem:[#allocation4 + $0xe0] sm:$0xff] }
  0x2d   :  { %223 = vmatpush1.msra.mxu1 %v89_v9  ;;  %343 = vmatprep.subr.mxu0 %v298_v10  ;;  %v444_v20 = vld [vmem:[#allocation6 + $0xe0] sm:$0xff]  ;;  %v294_v21 = vld [vmem:[#allocation4 + $0xd8] sm:$0xff]  ;;  %v293_v23 = vld [vmem:[#allocation4 + $0xd0] sm:$0xff] }
  0x2e   :  { %492 = vmatprep.subr.mxu1 %v447_v11  ;;  %v443_v22 = vld [vmem:[#allocation6 + $0xd8] sm:$0xff]  ;;  %v442_v24 = vld [vmem:[#allocation6 + $0xd0] sm:$0xff]  ;;  %v292_v25 = vld [vmem:[#allocation4 + $0xc8] sm:$0xff] }
  0x2f   :  { %v441_v26 = vld [vmem:[#allocation6 + $0xc8] sm:$0xff]  ;;  %v291_v27 = vld [vmem:[#allocation4 + $0xc0] sm:$0xff]  ;;  %v290_v29 = vld [vmem:[#allocation4 + $0xb8] sm:$0xff] }
  0x30   :  { %v440_v28 = vld [vmem:[#allocation6 + $0xc0] sm:$0xff]  ;;  %v439_v30 = vld [vmem:[#allocation6 + $0xb8] sm:$0xff]  ;;  %v289_v31 = vld [vmem:[#allocation4 + $0xb0] sm:$0xff] }
  0x31   :  { %v438_v32 = vld [vmem:[#allocation6 + $0xb0] sm:$0xff]  ;;  %v288_v33 = vld [vmem:[#allocation4 + $0xa8] sm:$0xff]  ;;  %v287_v35 = vld [vmem:[#allocation4 + $0xa0] sm:$0xff] }
  0x32   :  { %v437_v34 = vld [vmem:[#allocation6 + $0xa8] sm:$0xff]  ;;  %v436_v36 = vld [vmem:[#allocation6 + $0xa0] sm:$0xff]  ;;  %v286_v37 = vld [vmem:[#allocation4 + $0x98] sm:$0xff] }
  0x33   :  { %v435_v38 = vld [vmem:[#allocation6 + $0x98] sm:$0xff]  ;;  %v285_v39 = vld [vmem:[#allocation4 + $0x90] sm:$0xff]  ;;  %v284_v41 = vld [vmem:[#allocation4 + $0x88] sm:$0xff] }
  0x34   :  { %v434_v40 = vld [vmem:[#allocation6 + $0x90] sm:$0xff]  ;;  %v433_v42 = vld [vmem:[#allocation6 + $0x88] sm:$0xff]  ;;  %v283_v43 = vld [vmem:[#allocation4 + $0x80] sm:$0xff] }
  0x35   :  { %v432_v44 = vld [vmem:[#allocation6 + $0x80] sm:$0xff]  ;;  %v282_v45 = vld [vmem:[#allocation4 + $0x78] sm:$0xff]  ;;  %v281_v47 = vld [vmem:[#allocation4 + $0x70] sm:$0xff] }
  0x36   :  { %v431_v46 = vld [vmem:[#allocation6 + $0x78] sm:$0xff]  ;;  %v430_v48 = vld [vmem:[#allocation6 + $0x70] sm:$0xff]  ;;  %v280_v49 = vld [vmem:[#allocation4 + $0x68] sm:$0xff] }
  0x37   :  { %v429_v50 = vld [vmem:[#allocation6 + $0x68] sm:$0xff]  ;;  %v279_v51 = vld [vmem:[#allocation4 + $0x60] sm:$0xff]  ;;  %v278_v53 = vld [vmem:[#allocation4 + $0x58] sm:$0xff] }
  0x38   :  { %v428_v52 = vld [vmem:[#allocation6 + $0x60] sm:$0xff]  ;;  %v427_v54 = vld [vmem:[#allocation6 + $0x58] sm:$0xff]  ;;  %v277_v55 = vld [vmem:[#allocation4 + $0x50] sm:$0xff] }
  0x39   :  { %v426_v56 = vld [vmem:[#allocation6 + $0x50] sm:$0xff]  ;;  %v276_v57 = vld [vmem:[#allocation4 + $0x48] sm:$0xff]  ;;  %v275_v59 = vld [vmem:[#allocation4 + $0x40] sm:$0xff] }
  0x3a   :  { %v425_v58 = vld [vmem:[#allocation6 + $0x48] sm:$0xff]  ;;  %v424_v60 = vld [vmem:[#allocation6 + $0x40] sm:$0xff]  ;;  %v274_v61 = vld [vmem:[#allocation4 + $0x38] sm:$0xff] }
  0x3b   :  { %v423_v62 = vld [vmem:[#allocation6 + $0x38] sm:$0xff]  ;;  %v273_v63 = vld [vmem:[#allocation4 + $0x30] sm:$0xff]  ;;  %v272_v1 = vld [vmem:[#allocation4 + $0x28] sm:$0xff] }
  0x3c   :  { %v422_v0 = vld [vmem:[#allocation6 + $0x30] sm:$0xff]  ;;  %v421_v2 = vld [vmem:[#allocation6 + $0x28] sm:$0xff]  ;;  %v271_v3 = vld [vmem:[#allocation4 + $0x20] sm:$0xff] }
  0x3d   :  { %v420_v4 = vld [vmem:[#allocation6 + $0x20] sm:$0xff]  ;;  %v270_v5 = vld [vmem:[#allocation4 + $0x18] sm:$0xff]  ;;  %v269_v7 = vld [vmem:[#allocation4 + $0x10] sm:$0xff] }
  0x3e   :  { %v419_v6 = vld [vmem:[#allocation6 + $0x18] sm:$0xff]  ;;  %v418_v8 = vld [vmem:[#allocation6 + $0x10] sm:$0xff]  ;;  %v268_v9 = vld [vmem:[#allocation4 + $0x8] sm:$0xff] }
  0x3f   :  { %v417_v10 = vld [vmem:[#allocation6 + $0x8] sm:$0xff]  ;;  %v267_v11 = vld [vmem:[#allocation4] sm:$0xff] }
  0x9b   :  { %v83_v13 = vpop.permute.xlu0 %82 }
  0x9c   :  { %v86_v16 = vsel %vm85_vm0, %v79_v12, %v83_v13  ;;  %v416_v12 = vld [vmem:[#allocation6] sm:$0xff]  ;;  %v330_v13 = vld [vmem:[#allocation4 + $0x1f8] sm:$0xff] }
  0x9d   :  { %617 = vmatmul.mubr.msk.f32.vlgmr.msra.gmra.mxu0 %vm117_vm1, %v86_v16  ;;  %618 = vmatmul.mubr.msk.f32.vlgmr.msra.gmra.mxu1 %vm117_vm1, %v86_v16  ;;  %v478_v16 = vld [vmem:[#allocation6 + $0x1f0] sm:$0xff] }
  0x9e   :  { %344 = vmatpush1.msra.mxu0 %v297_v14  ;;  %493 = vmatpush1.msra.mxu1 %v446_v15  ;;  %v479_v14 = vld [vmem:[#allocation6 + $0x1f8] sm:$0xff]  ;;  %v329_v15 = vld [vmem:[#allocation4 + $0x1f0] sm:$0xff] }
  0x9f   :  { %345 = vmatprep.subr.mxu0 %v296_v17  ;;  %494 = vmatprep.subr.mxu1 %v445_v18  ;;  %v328_v17 = vld [vmem:[#allocation4 + $0x1e8] sm:$0xff] }
  0xa0   :  { %346 = vmatpush1.msra.mxu0 %v295_v19  ;;  %495 = vmatpush1.msra.mxu1 %v444_v20  ;;  %v477_v18 = vld [vmem:[#allocation6 + $0x1e8] sm:$0xff]  ;;  %v327_v19 = vld [vmem:[#allocation4 + $0x1e0] sm:$0xff] }
  0xa1   :  { %347 = vmatprep.subr.mxu0 %v294_v21  ;;  %496 = vmatprep.subr.mxu1 %v443_v22  ;;  %v476_v20 = vld [vmem:[#allocation6 + $0x1e0] sm:$0xff]  ;;  %v326_v21 = vld [vmem:[#allocation4 + $0x1d8] sm:$0xff] }
  0xa2   :  { %348 = vmatpush1.msra.mxu0 %v293_v23  ;;  %497 = vmatpush1.msra.mxu1 %v442_v24  ;;  %v475_v22 = vld [vmem:[#allocation6 + $0x1d8] sm:$0xff]  ;;  %v325_v23 = vld [vmem:[#allocation4 + $0x1d0] sm:$0xff] }
  0xa3   :  { %349 = vmatprep.subr.mxu0 %v292_v25  ;;  %498 = vmatprep.subr.mxu1 %v441_v26  ;;  %v474_v24 = vld [vmem:[#allocation6 + $0x1d0] sm:$0xff]  ;;  %v324_v25 = vld [vmem:[#allocation4 + $0x1c8] sm:$0xff] }
  0xa4   :  { %350 = vmatpush1.msra.mxu0 %v291_v27  ;;  %499 = vmatpush1.msra.mxu1 %v440_v28  ;;  %v473_v26 = vld [vmem:[#allocation6 + $0x1c8] sm:$0xff]  ;;  %v323_v27 = vld [vmem:[#allocation4 + $0x1c0] sm:$0xff] }
  0xa5   :  { %351 = vmatprep.subr.mxu0 %v290_v29  ;;  %500 = vmatprep.subr.mxu1 %v439_v30  ;;  %v472_v28 = vld [vmem:[#allocation6 + $0x1c0] sm:$0xff]  ;;  %v322_v29 = vld [vmem:[#allocation4 + $0x1b8] sm:$0xff] }
  0xa6   :  { %352 = vmatpush1.msra.mxu0 %v289_v31  ;;  %501 = vmatpush1.msra.mxu1 %v438_v32  ;;  %v471_v30 = vld [vmem:[#allocation6 + $0x1b8] sm:$0xff]  ;;  %v321_v31 = vld [vmem:[#allocation4 + $0x1b0] sm:$0xff] }
  0xa7   :  { %353 = vmatprep.subr.mxu0 %v288_v33  ;;  %502 = vmatprep.subr.mxu1 %v437_v34  ;;  %v470_v32 = vld [vmem:[#allocation6 + $0x1b0] sm:$0xff]  ;;  %v320_v33 = vld [vmem:[#allocation4 + $0x1a8] sm:$0xff] }
  0xa8   :  { %354 = vmatpush1.msra.mxu0 %v287_v35  ;;  %503 = vmatpush1.msra.mxu1 %v436_v36  ;;  %v469_v34 = vld [vmem:[#allocation6 + $0x1a8] sm:$0xff]  ;;  %v319_v35 = vld [vmem:[#allocation4 + $0x1a0] sm:$0xff] }
  0xa9   :  { %355 = vmatprep.subr.mxu0 %v286_v37  ;;  %504 = vmatprep.subr.mxu1 %v435_v38  ;;  %v468_v36 = vld [vmem:[#allocation6 + $0x1a0] sm:$0xff]  ;;  %v318_v37 = vld [vmem:[#allocation4 + $0x198] sm:$0xff] }
  0xaa   :  { %356 = vmatpush1.msra.mxu0 %v285_v39  ;;  %505 = vmatpush1.msra.mxu1 %v434_v40  ;;  %v467_v38 = vld [vmem:[#allocation6 + $0x198] sm:$0xff]  ;;  %v317_v39 = vld [vmem:[#allocation4 + $0x190] sm:$0xff] }
  0xab   :  { %357 = vmatprep.subr.mxu0 %v284_v41  ;;  %506 = vmatprep.subr.mxu1 %v433_v42  ;;  %v466_v40 = vld [vmem:[#allocation6 + $0x190] sm:$0xff]  ;;  %v316_v41 = vld [vmem:[#allocation4 + $0x188] sm:$0xff] }
  0xac   :  { %358 = vmatpush1.msra.mxu0 %v283_v43  ;;  %507 = vmatpush1.msra.mxu1 %v432_v44  ;;  %v465_v42 = vld [vmem:[#allocation6 + $0x188] sm:$0xff]  ;;  %v315_v43 = vld [vmem:[#allocation4 + $0x180] sm:$0xff] }
  0xad   :  { %359 = vmatprep.subr.mxu0 %v282_v45  ;;  %508 = vmatprep.subr.mxu1 %v431_v46  ;;  %v464_v44 = vld [vmem:[#allocation6 + $0x180] sm:$0xff]  ;;  %v314_v45 = vld [vmem:[#allocation4 + $0x178] sm:$0xff] }
  0xae   :  { %360 = vmatpush1.msra.mxu0 %v281_v47  ;;  %509 = vmatpush1.msra.mxu1 %v430_v48  ;;  %v463_v46 = vld [vmem:[#allocation6 + $0x178] sm:$0xff]  ;;  %v313_v47 = vld [vmem:[#allocation4 + $0x170] sm:$0xff] }
  0xaf   :  { %361 = vmatprep.subr.mxu0 %v280_v49  ;;  %510 = vmatprep.subr.mxu1 %v429_v50  ;;  %v462_v48 = vld [vmem:[#allocation6 + $0x170] sm:$0xff]  ;;  %v312_v49 = vld [vmem:[#allocation4 + $0x168] sm:$0xff] }
  0xb0   :  { %362 = vmatpush1.msra.mxu0 %v279_v51  ;;  %511 = vmatpush1.msra.mxu1 %v428_v52  ;;  %v461_v50 = vld [vmem:[#allocation6 + $0x168] sm:$0xff]  ;;  %v311_v51 = vld [vmem:[#allocation4 + $0x160] sm:$0xff] }
  0xb1   :  { %363 = vmatprep.subr.mxu0 %v278_v53  ;;  %512 = vmatprep.subr.mxu1 %v427_v54  ;;  %v460_v52 = vld [vmem:[#allocation6 + $0x160] sm:$0xff]  ;;  %v310_v53 = vld [vmem:[#allocation4 + $0x158] sm:$0xff] }
  0xb2   :  { %364 = vmatpush1.msra.mxu0 %v277_v55  ;;  %513 = vmatpush1.msra.mxu1 %v426_v56  ;;  %v459_v54 = vld [vmem:[#allocation6 + $0x158] sm:$0xff]  ;;  %v309_v55 = vld [vmem:[#allocation4 + $0x150] sm:$0xff] }
  0xb3   :  { %365 = vmatprep.subr.mxu0 %v276_v57  ;;  %514 = vmatprep.subr.mxu1 %v425_v58  ;;  %v458_v56 = vld [vmem:[#allocation6 + $0x150] sm:$0xff]  ;;  %v308_v57 = vld [vmem:[#allocation4 + $0x148] sm:$0xff] }
  0xb4   :  { %366 = vmatpush1.msra.mxu0 %v275_v59  ;;  %515 = vmatpush1.msra.mxu1 %v424_v60  ;;  %v457_v58 = vld [vmem:[#allocation6 + $0x148] sm:$0xff]  ;;  %v307_v59 = vld [vmem:[#allocation4 + $0x140] sm:$0xff] }
  0xb5   :  { %367 = vmatprep.subr.mxu0 %v274_v61  ;;  %516 = vmatprep.subr.mxu1 %v423_v62  ;;  %v456_v60 = vld [vmem:[#allocation6 + $0x140] sm:$0xff]  ;;  %v306_v61 = vld [vmem:[#allocation4 + $0x138] sm:$0xff] }
  0xb6   :  { %368 = vmatpush1.msra.mxu0 %v273_v63  ;;  %517 = vmatpush1.msra.mxu1 %v422_v0  ;;  %v455_v62 = vld [vmem:[#allocation6 + $0x138] sm:$0xff]  ;;  %v305_v63 = vld [vmem:[#allocation4 + $0x130] sm:$0xff] }
  0xb7   :  { %369 = vmatprep.subr.mxu0 %v272_v1  ;;  %518 = vmatprep.subr.mxu1 %v421_v2  ;;  %v454_v0 = vld [vmem:[#allocation6 + $0x130] sm:$0xff]  ;;  %v304_v1 = vld [vmem:[#allocation4 + $0x128] sm:$0xff] }
  0xb8   :  { %370 = vmatpush1.msra.mxu0 %v271_v3  ;;  %519 = vmatpush1.msra.mxu1 %v420_v4  ;;  %v453_v2 = vld [vmem:[#allocation6 + $0x128] sm:$0xff]  ;;  %v303_v3 = vld [vmem:[#allocation4 + $0x120] sm:$0xff] }
  0xb9   :  { %371 = vmatprep.subr.mxu0 %v270_v5  ;;  %520 = vmatprep.subr.mxu1 %v419_v6  ;;  %v452_v4 = vld [vmem:[#allocation6 + $0x120] sm:$0xff]  ;;  %v302_v5 = vld [vmem:[#allocation4 + $0x118] sm:$0xff] }
  0xba   :  { %372 = vmatpush1.msra.mxu0 %v269_v7  ;;  %521 = vmatpush1.msra.mxu1 %v418_v8  ;;  %v451_v6 = vld [vmem:[#allocation6 + $0x118] sm:$0xff]  ;;  %v301_v7 = vld [vmem:[#allocation4 + $0x110] sm:$0xff] }
  0xbb   :  { %373 = vmatprep.subr.mxu0 %v268_v9  ;;  %522 = vmatprep.subr.mxu1 %v417_v10  ;;  %v450_v8 = vld [vmem:[#allocation6 + $0x110] sm:$0xff]  ;;  %v300_v9 = vld [vmem:[#allocation4 + $0x108] sm:$0xff] }
  0xbc   :  { %374 = vmatpush1.msra.mxu0 %v267_v11  ;;  %523 = vmatpush1.msra.mxu1 %v416_v12  ;;  %v449_v10 = vld [vmem:[#allocation6 + $0x108] sm:$0xff]  ;;  %v299_v11 = vld [vmem:[#allocation4 + $0x100] sm:$0xff] }
  0xbd   :  { %375 = vmatprep.subr.mxu0 %v330_v13  ;;  %524 = vmatprep.subr.mxu1 %v479_v14  ;;  %v448_v12 = vld [vmem:[#allocation6 + $0x100] sm:$0xff]  ;;  %v97_v13 = vlaneseq }
  0xbe   :  { %376 = vmatpush2.msra.mxu0 %v329_v15  ;;  %525 = vmatpush2.msra.mxu1 %v478_v16 }
  0xbf   :  { %377 = vmatprep.subr.mxu0 %v328_v17  ;;  %526 = vmatprep.subr.mxu1 %v477_v18  ;;  %v98_v14 = vshrl.u32 %v97_v13, 7  ;;  %v95_v17 = vld [vmem:[%s801_s3] sm:$0xf] }
  0xc0   :  { %378 = vmatpush2.msra.mxu0 %v327_v19  ;;  %527 = vmatpush2.msra.mxu1 %v476_v20 }
  0xc1   :  { %379 = vmatprep.subr.mxu0 %v326_v21  ;;  %528 = vmatprep.subr.mxu1 %v475_v22  ;;  %v99_v15 = vsub.s32 0, %v98_v14  ;;  %v107_v16 = vsub.s32 2, %v98_v14  ;;  %v103_v18 = vsub.s32 1, %v98_v14  ;;  %v111_v19 = vsub.s32 3, %v98_v14 }
  0xc2   :  { %380 = vmatpush2.msra.mxu0 %v325_v23  ;;  %529 = vmatpush2.msra.mxu1 %v474_v24 }
  0xc3   :  { %381 = vmatprep.subr.mxu0 %v324_v25  ;;  %530 = vmatprep.subr.mxu1 %v473_v26  ;;  %v100_v20 = vrot.slane %v95_v17, %v99_v15  ;;  %v108_v21 = vrot.slane %v95_v17, %v107_v16  ;;  %v104_v22 = vrot.slane %v95_v17, %v103_v18 }
  0xc4   :  { %382 = vmatpush2.msra.mxu0 %v323_v27  ;;  %531 = vmatpush2.msra.mxu1 %v472_v28  ;;  %v112_v23 = vrot.slane %v95_v17, %v111_v19 }
  0xc5   :  { %383 = vmatprep.subr.mxu0 %v322_v29  ;;  %532 = vmatprep.subr.mxu1 %v471_v30 }
  0xc6   :  { %384 = vmatpush2.msra.mxu0 %v321_v31  ;;  %533 = vmatpush2.msra.mxu1 %v470_v32 }
  0xc7   :  { %385 = vmatprep.subr.mxu0 %v320_v33  ;;  %534 = vmatprep.subr.mxu1 %v469_v34 }
  0xc8   :  { %386 = vmatpush2.msra.mxu0 %v319_v35  ;;  %535 = vmatpush2.msra.mxu1 %v468_v36  ;;  %v331_v36 = vld [vmem:[%s803_s5] sm:$0x3] }
  0xc9   :  { %387 = vmatprep.subr.mxu0 %v318_v37  ;;  %536 = vmatprep.subr.mxu1 %v467_v38  ;;  %v480_v37 = vld [vmem:[%s805_s7] sm:$0x3]  ;;  %v336_v38 = vrot.slane %v331_v36, %v99_v15 }
  0xca   :  { %388 = vmatpush2.msra.mxu0 %v317_v39  ;;  %537 = vmatpush2.msra.mxu1 %v466_v40  ;;  %v485_v39 = vrot.slane %v480_v37, %v99_v15  ;;  %v565_v40 = vld [vmem:[%s806_s8] sm:$0x3] }
  0xcb   :  { %389 = vmatprep.subr.mxu0 %v316_v41  ;;  %538 = vmatprep.subr.mxu1 %v465_v42  ;;  %v340_v41 = vrot.slane %v331_v36, %v103_v18  ;;  %v489_v42 = vrot.slane %v480_v37, %v103_v18 }
  0xcc   :  { %390 = vmatpush2.msra.mxu0 %v315_v43  ;;  %539 = vmatpush2.msra.mxu1 %v464_v44  ;;  %v582_v43 = vld [vmem:[%s807_s9] sm:$0x3] }
  0xcd   :  { %391 = vmatprep.subr.mxu0 %v314_v45  ;;  %540 = vmatprep.subr.mxu1 %v463_v46 }
  0xce   :  { %392 = vmatpush2.msra.mxu0 %v313_v47  ;;  %541 = vmatpush2.msra.mxu1 %v462_v48  ;;  %v570_v48 = vrot.slane %v565_v40, %v99_v15 }
  0xcf   :  { %393 = vmatprep.subr.mxu0 %v312_v49  ;;  %542 = vmatprep.subr.mxu1 %v461_v50  ;;  %v574_v50 = vrot.slane %v565_v40, %v103_v18 }
  0xd0   :  { %394 = vmatpush2.msra.mxu0 %v311_v51  ;;  %543 = vmatpush2.msra.mxu1 %v460_v52  ;;  %v587_v52 = vrot.slane %v582_v43, %v99_v15 }
  0xd1   :  { %395 = vmatprep.subr.mxu0 %v310_v53  ;;  %544 = vmatprep.subr.mxu1 %v459_v54  ;;  %v591_v53 = vrot.slane %v582_v43, %v103_v18 }
  0xd2   :  { %396 = vmatpush2.msra.mxu0 %v309_v55  ;;  %545 = vmatpush2.msra.mxu1 %v458_v56 }
  0xd3   :  { %397 = vmatprep.subr.mxu0 %v308_v57  ;;  %546 = vmatprep.subr.mxu1 %v457_v58 }
  0xd4   :  { %398 = vmatpush2.msra.mxu0 %v307_v59  ;;  %547 = vmatpush2.msra.mxu1 %v456_v60 }
  0xd5   :  { %399 = vmatprep.subr.mxu0 %v306_v61  ;;  %548 = vmatprep.subr.mxu1 %v455_v62 }
  0xd6   :  { %400 = vmatpush2.msra.mxu0 %v305_v63  ;;  %549 = vmatpush2.msra.mxu1 %v454_v0 }
  0xd7   :  { %401 = vmatprep.subr.mxu0 %v304_v1  ;;  %550 = vmatprep.subr.mxu1 %v453_v2  ;;  %v619_v2 = vld [vmem:[%s808_s10] ss:$0 sm:$0xff] }
  0xd8   :  { %402 = vmatpush2.msra.mxu0 %v303_v3  ;;  %551 = vmatpush2.msra.mxu1 %v452_v4 }
  0xd9   :  { %403 = vmatprep.subr.mxu0 %v302_v5  ;;  %552 = vmatprep.subr.mxu1 %v451_v6 }
  0xda   :  { %404 = vmatpush2.msra.mxu0 %v301_v7  ;;  %553 = vmatpush2.msra.mxu1 %v450_v8 }
  0xdb   :  { %405 = vmatprep.subr.mxu0 %v300_v9  ;;  %554 = vmatprep.subr.mxu1 %v449_v10 }
  0xdc   :  { %406 = vmatpush2.msra.mxu0 %v299_v11  ;;  %555 = vmatpush2.msra.mxu1 %v448_v12 }
 0x15d   :  { %v187_v24 = vpop.f32.mrf.mxu0  ;;  %v258_v25 = vpop.f32.mrf.mxu1 }
 0x15e   :  { %v188_v26 = vadd.f32 %v187_v24, %v100_v20  ;;  %v259_v27 = vadd.f32 %v258_v25, %v108_v21 }
 0x15f   :  { %v189_v28 = vpop.f32.mrf.mxu0  ;;  %v260_v29 = vpop.f32.mrf.mxu1 }
 0x160   :  { %v190_v30 = vadd.f32 %v189_v28, %v104_v22  ;;  %v261_v31 = vadd.f32 %v260_v29, %v112_v23  ;;  %v263_v34 = vmax.f32 %v188_v26, 0.0  ;;  %v265_v35 = vmax.f32 %v259_v27, 0.0 }
 0x162   :  { %v264_v32 = vmax.f32 %v190_v30, 0.0  ;;  %v266_v33 = vmax.f32 %v261_v31, 0.0 }
 0x164   :  { %407 = vmatprep.mubr.f32.mxu0 %v264_v32  ;;  %556 = vmatprep.mubr.f32.mxu1 %v266_v33 }
 0x165   :  { %408 = vmatmul.mubr.f32.vlgmr.msra.gmra.mxu0 %v263_v34  ;;  %557 = vmatmul.mubr.f32.vlgmr.msra.gmra.mxu1 %v265_v35 }
 0x225   :  { %v409_v44 = vpop.f32.mrf.mxu0  ;;  %v558_v45 = vpop.f32.mrf.mxu1 }
 0x226   :  { %v410_v46 = vadd.f32 %v409_v44, %v336_v38  ;;  %v559_v47 = vadd.f32 %v558_v45, %v485_v39 }
 0x227   :  { %v411_v49 = vpop.f32.mrf.mxu0  ;;  %v560_v51 = vpop.f32.mrf.mxu1 }
 0x228   :  { %v414_v54 = vmax.f32 %v410_v46, 0.0  ;;  %v563_v55 = vmax.f32 %v559_v47, 0.0  ;;  %v412_v56 = vadd.f32 %v411_v49, %v340_v41  ;;  %v561_v57 = vadd.f32 %v560_v51, %v489_v42 }
 0x22a   :  { %v415_v58 = vmax.f32 %v412_v56, 0.0  ;;  %v564_v59 = vmax.f32 %v561_v57, 0.0  ;;  %v577_v60 = vmul.f32 %v570_v48, %v414_v54  ;;  %v594_v62 = vmul.f32 %v587_v52, %v563_v55 }
 0x22c   :  { %v578_v61 = vmul.f32 %v574_v50, %v415_v58  ;;  %v595_v63 = vmul.f32 %v591_v53, %v564_v59 }
 0x22e   :  { %v596_v0 = vadd.f32 %v595_v63, %v594_v62  ;;  %v579_v1 = vadd.f32 %v578_v61, %v577_v60 }
 0x230   :  { %597 = vadd.xlane.f32.xlu1 %v596_v0  ;;  %580 = vadd.xlane.f32.xlu0 %v579_v1 }
 0x2b9   :  { %v598_v3 = vpop.xlane.xlu1 %597  ;;  %v581_v4 = vpop.xlane.xlu0 %580 }
 0x2ba   :  { %v600_v5 = vsel %vm599_vm2, %v581_v4, %v598_v3 }
 0x2bb   :  { %v608_v6 = vadd.f32 %v619_v2, %v600_v5 }
 0x2bd   :  { %610 = vst.msk [vmem:[%s809_s11] sm:$0xff] %vm609_vm3, %v608_v6 }
 0x2be   :  { %615 = vsyncpa [#allocation3], 1 }
 0x2bf   :  { %616 = vsyncpa [#allocation5], 1 }

</bundles_post_ra>
